<compile_context>
chip_gen: v6e
topology: v6e:2x2x1
jax: 0.10.0
libtpu: 0.0.40
codegen_flags: <defaults>
</compile_context>

<pallas_src>
import functools

import jax
import jax.numpy as jnp
from jax import lax
from jax.experimental import pallas as pl
from jax.experimental.pallas import tpu as pltpu


def _round_up(x: int, m: int) -> int:
    return ((x + m - 1) // m) * m


def _resident_spec(shape):
    """BlockSpec for a weight held resident in VMEM (constant block index).

    The block index never changes across the grid, so the second pipeline
    buffer would be pure VMEM waste: request single-buffering when available.
    """
    index_map = lambda i: (0,) * len(shape)
    if hasattr(pl, "Buffered"):
        try:
            return pl.BlockSpec(shape, index_map, pipeline_mode=pl.Buffered(1))
        except Exception:  # very old BlockSpec without pipeline_mode kwarg
            pass
    return pl.BlockSpec(shape, index_map)


def _pick_th(hidden: int) -> int:
    """Largest hidden-chunk size in {1024,512,256,128} that divides H."""
    for cand in (1024, 512, 256, 128):
        if hidden % cand == 0:
            return cand
    return hidden  # odd small H: no chunking


def ffn_kernel(x_ref, w13_ref, w2_ref, o_ref, *, hidden, th, n_chunks):
    # x_ref: (tm, D)   w13_ref: (D, 2H)   w2_ref: (H, D)   o_ref: (tm, D)
    x = x_ref[...]                       # keep native dtype for the MXU
    tm = x.shape[0]
    d = o_ref.shape[-1]

    def chunk(c, acc):
        if isinstance(c, int):           # unrolled / single-chunk path: static slices
            off = c * th
        else:                            # rolled loop: hint alignment of the start
            off = pl.multiple_of(c * th, th)
        # Gate projections for this hidden slice, f32 accumulation on the MXU.
        h1 = jnp.dot(x, w13_ref[:, pl.ds(off, th)],
                     preferred_element_type=jnp.float32)            # (tm, th)
        h3 = jnp.dot(x, w13_ref[:, pl.ds(hidden + off, th)],
                     preferred_element_type=jnp.float32)            # (tm, th)
        # SwiGLU gate in f32 (VPU/EUP), cast back before the down-projection
        # so the second matmul runs at the bf16 MXU rate when weights are bf16.
        g = (h1 * jax.nn.sigmoid(h1)) * h3
        return acc + jnp.dot(g.astype(w2_ref.dtype),
                             w2_ref[pl.ds(off, th), :],
                             preferred_element_type=jnp.float32)    # (tm, D)

    acc0 = jnp.zeros((tm, d), jnp.float32)
    if n_chunks == 1:
        acc = chunk(0, acc0)
    else:
        acc = lax.fori_loop(0, n_chunks, chunk, acc0, unroll=(n_chunks <= 8))
    o_ref[...] = acc.astype(o_ref.dtype)


@functools.partial(jax.jit, static_argnames=("tm",))
def feed_forward(x_bld, w13, w2, *, tm=512):
    """SwiGLU FFN: w2(silu(x @ w1) * (x @ w3)) with w13 = concat([w1, w3], axis=1).

    Weights are (in_features, out_features).
    """
    B, L, D = x_bld.shape
    H = w13.shape[1] // 2
    assert w13.shape == (D, 2 * H) and w2.shape == (H, D)
    rows = B * L

    # Row tile: one full-extent tile for small problems, else a multiple of 128
    # (MXU / sublane friendly).  The partial last tile is masked by Pallas.
    tm_eff = rows if rows <= tm else _round_up(tm, 128)

    # Hidden-dim chunking (keeps f32 intermediates at (tm, th)).
    th = _pick_th(H)
    n_chunks = H // th

    x2d = x_bld.reshape(rows, D)

    # Explicit VMEM budget: single-buffered resident weights, double-buffered
    # x/out row tiles, the real f32 intermediates, plus compiler headroom.
    xsz = jnp.dtype(x_bld.dtype).itemsize
    wsz = jnp.dtype(w13.dtype).itemsize
    weight_bufs = 1 if hasattr(pl, "Buffered") else 2
    est = (weight_bufs * 3 * D * H * wsz    # w13 (D,2H) + w2 (H,D) resident
           + 2 * tm_eff * D * xsz           # x tile, double buffered
           + 2 * tm_eff * D * xsz           # out tile, double buffered
           + 3 * tm_eff * th * 4            # h1, h3, gate (f32) per chunk
           + tm_eff * D * 4                 # f32 accumulator
           + (4 << 20))                     # compiler scratch headroom
    try:
        vmem_cap = int(pltpu.get_tpu_info().vmem_capacity_bytes)
    except Exception:
        vmem_cap = 64 << 20                 # conservative (v7x per-TC) fallback
    vmem_limit = int(min(max(est, 32 << 20), int(vmem_cap * 0.9)))

    out2d = pl.pallas_call(
        functools.partial(ffn_kernel, hidden=H, th=th, n_chunks=n_chunks),
        out_shape=jax.ShapeDtypeStruct((rows, D), x_bld.dtype),
        grid_spec=pltpu.PrefetchScalarGridSpec(
            num_scalar_prefetch=0,
            grid=(pl.cdiv(rows, tm_eff),),
            in_specs=[
                pl.BlockSpec((tm_eff, D), lambda i: (i, 0)),  # x row tile
                _resident_spec((D, 2 * H)),                   # fused w1|w3
                _resident_spec((H, D)),                       # w2
            ],
            out_specs=pl.BlockSpec((tm_eff, D), lambda i: (i, 0)),
        ),
        compiler_params=pltpu.CompilerParams(
            dimension_semantics=("parallel",),   # shard rows across TCs (v7x)
            vmem_limit_bytes=vmem_limit,
        ),
    )(x2d, w13, w2)

    return out2d.reshape(B, L, D)


def feed_forward_ref(x_bld, w1, w3, w2):
    """Pure-JAX reference matching the PyTorch forward."""
    h1 = x_bld @ w1
    h3 = x_bld @ w3
    gate = (h1 * jax.nn.sigmoid(h1)) * h3
    return (gate @ w2).astype(x_bld.dtype)


if __name__ == "__main__":
    B, L, dim = 2, 8, 32
    hidden = dim * 4  # 128

    key = jax.random.PRNGKey(0)
    kx, k1, k2, k3 = jax.random.split(key, 4)

    x_BLD = jax.random.normal(kx, (B, L, dim), dtype=jnp.float32)
    # Weights stored as (in_features, out_features).
    w1 = jax.random.normal(k1, (dim, hidden), dtype=jnp.float32) * 0.02
    w3 = jax.random.normal(k3, (dim, hidden), dtype=jnp.float32) * 0.02
    w2 = jax.random.normal(k2, (hidden, dim), dtype=jnp.float32) * 0.02

    # One-time fusion of the two gate projections (done outside the kernel /
    # jit so it is not re-materialized every call).
    w13 = jnp.concatenate([w1, w3], axis=1)

    out = feed_forward(x_BLD, w13, w2)
    out = jax.block_until_ready(out)

    ref = feed_forward_ref(x_BLD, w1, w3, w2)
    assert out.shape == (B, L, dim)
    assert jnp.allclose(out, ref, atol=2e-3, rtol=2e-3), "mismatch vs reference"

    print("KERNEL_OK")
</pallas_src>

<mosaic_0001>
module attributes {stable_mosaic.version = 11 : i64} {
  func.func @ffn_kernel(%arg0: i32, %arg1: memref<16x32xf32, #tpu.memory_space<vmem>>, %arg2: memref<32x256xf32, #tpu.memory_space<vmem>>, %arg3: memref<128x32xf32, #tpu.memory_space<vmem>>, %arg4: memref<16x32xf32, #tpu.memory_space<vmem>>) attributes {dimension_semantics = [#tpu.dimension_semantics<parallel>], iteration_bounds = array<i64: 1>, scalar_prefetch = 0 : i64, scratch_operands = 0 : i64, tpu.core_type = #tpu.core_type<tc>, window_params = [{transform_indices = @transform_0, window_bounds = array<i64: 16, 32>}, {pipeline_mode = #tpu.pipeline_mode<synchronous>, transform_indices = @transform_1, window_bounds = array<i64: 32, 256>}, {pipeline_mode = #tpu.pipeline_mode<synchronous>, transform_indices = @transform_2, window_bounds = array<i64: 128, 32>}, {transform_indices = @transform_3, window_bounds = array<i64: 16, 32>}]} {
    %c0 = arith.constant 0 : index
    %c0_0 = arith.constant 0 : index
    %0 = vector.load %arg1[%c0, %c0_0] : memref<16x32xf32, #tpu.memory_space<vmem>>, vector<16x32xf32>
    %cst = arith.constant 0.000000e+00 : f32
    %1 = vector.broadcast %cst : f32 to vector<16x32xf32>
    %c0_1 = arith.constant 0 : index
    %c0_2 = arith.constant 0 : index
    %2 = vector.load %arg2[%c0_1, %c0_2] : memref<32x256xf32, #tpu.memory_space<vmem>>, vector<32x128xf32>
    %cst_3 = arith.constant dense<0.000000e+00> : vector<16x128xf32>
    %3 = tpu.matmul %0, %2, %cst_3 {dimension_numbers = #tpu.dot_dimension_numbers<[1], [0], [0], [1], [0, 0, 1, 1], [], []>} : vector<16x32xf32>, vector<32x128xf32>, vector<16x128xf32> -> vector<16x128xf32>
    %c0_4 = arith.constant 0 : index
    %c128 = arith.constant 128 : index
    %4 = vector.load %arg2[%c0_4, %c128] : memref<32x256xf32, #tpu.memory_space<vmem>>, vector<32x128xf32>
    %cst_5 = arith.constant dense<0.000000e+00> : vector<16x128xf32>
    %5 = tpu.matmul %0, %4, %cst_5 {dimension_numbers = #tpu.dot_dimension_numbers<[1], [0], [0], [1], [0, 0, 1, 1], [], []>} : vector<16x32xf32>, vector<32x128xf32>, vector<16x128xf32> -> vector<16x128xf32>
    %6 = arith.negf %3 : vector<16x128xf32>
    %7 = math.exp %6 : vector<16x128xf32>
    %cst_6 = arith.constant 1.000000e+00 : f32
    %8 = vector.broadcast %cst_6 : f32 to vector<16x128xf32>
    %9 = arith.addf %8, %7 : vector<16x128xf32>
    %10 = arith.divf %8, %9 : vector<16x128xf32>
    %11 = arith.mulf %3, %10 : vector<16x128xf32>
    %12 = arith.mulf %11, %5 : vector<16x128xf32>
    %c0_7 = arith.constant 0 : index
    %c0_8 = arith.constant 0 : index
    %13 = vector.load %arg3[%c0_7, %c0_8] : memref<128x32xf32, #tpu.memory_space<vmem>>, vector<128x32xf32>
    %cst_9 = arith.constant dense<0.000000e+00> : vector<16x32xf32>
    %14 = tpu.matmul %12, %13, %cst_9 {dimension_numbers = #tpu.dot_dimension_numbers<[1], [0], [0], [1], [0, 0, 1, 1], [], []>} : vector<16x128xf32>, vector<128x32xf32>, vector<16x32xf32> -> vector<16x32xf32>
    %15 = arith.addf %1, %14 : vector<16x32xf32>
    %c0_10 = arith.constant 0 : index
    %c0_11 = arith.constant 0 : index
    %16 = vector.load %arg4[%c0_10, %c0_11] : memref<16x32xf32, #tpu.memory_space<vmem>>, vector<16x32xf32>
    tpu.vector_store %arg4[%c0_10, %c0_11], %15 {strides = array<i32>} : memref<16x32xf32, #tpu.memory_space<vmem>>, vector<16x32xf32>,
    return
  }
  func.func @transform_0(%arg0: i32) -> (i32, i32) {
    %c0_i32 = arith.constant 0 : i32
    %c0_i32_0 = arith.constant 0 : i32
    return %arg0, %c0_i32 : i32, i32
  }
  func.func @transform_1(%arg0: i32) -> (i32, i32) {
    %c0_i32 = arith.constant 0 : i32
    %c0_i32_0 = arith.constant 0 : i32
    %c0_i32_1 = arith.constant 0 : i32
    return %c0_i32, %c0_i32_0 : i32, i32
  }
  func.func @transform_2(%arg0: i32) -> (i32, i32) {
    %c0_i32 = arith.constant 0 : i32
    %c0_i32_0 = arith.constant 0 : i32
    %c0_i32_1 = arith.constant 0 : i32
    return %c0_i32, %c0_i32_0 : i32, i32
  }
  func.func @transform_3(%arg0: i32) -> (i32, i32) {
    %c0_i32 = arith.constant 0 : i32
    %c0_i32_0 = arith.constant 0 : i32
    return %arg0, %c0_i32 : i32, i32
  }
}

</mosaic_0001>

<bundles_post_ra>
// kernel: feed_forward.1
= control target key start
LH: loop header
LB: loop body
LE: loop exit
PB: predicated region body
PF: predicated region fallthrough
CT: control target
= control target key end

     0   :  { %vm21_vm0 = vcmask 261120   ;;  %s543_s0 = inlined_call_operand.vmem [shape: f32[16,32], index: 0, kind: input, shape index: {}]   ;;  %s544_s1 = inlined_call_operand.vmem [shape: f32[32,256], index: 1, kind: input, shape index: {}]   ;;  %s545_s2 = inlined_call_operand.vmem [shape: f32[128,32], index: 2, kind: input, shape index: {}]   ;;  %s546_s3 = inlined_call_operand.hbm [shape: f32[16,32], index: 3, kind: output, shape index: {}]  }
   0x1   :  { %v20_v0 = vld [vmem:[%s544_s1 + $0x30] sm:$0xff]  ;;  %v19_v1 = vld [vmem:[%s544_s1 + $0x20] sm:$0xff] }
   0x2   :  { %343 = vmatprep.subr.mxu1 %v20_v0  ;;  %v15_v2 = vld [vmem:[%s543_s0] sm:$0xff]  ;;  %v18_v3 = vld [vmem:[%s544_s1 + $0x10] sm:$0xff] }
   0x3   :  { %344 = vmatpush3.msra.mxu1 %v20_v0  ;;  %351 = vmatprep.mubr.msk.f32.mxu1 %vm21_vm0, %v15_v2 }
   0x4   :  { %345 = vmatprep.subr.mxu1 %v19_v1 }
   0x5   :  { %8 = vsyncpa [#allocation3], 0  ;;  %346 = vmatpush3.msra.mxu1 %v19_v1  ;;  %v17_v4 = vld [vmem:[%s544_s1] sm:$0xff]  ;;  %v16_v5 = vld [vmem:[%s543_s0 + $0x8] sm:$0xff] }
   0x6   :  { %347 = vmatprep.subr.mxu1 %v18_v3  ;;  %v106_v6 = vld [vmem:[%s544_s1 + $0x38] sm:$0xff]  ;;  %v105_v7 = vld [vmem:[%s544_s1 + $0x28] sm:$0xff]  ;;  %v212_v11 = vld [vmem:[%s545_s2 + $0x70] sm:$0xff] }
   0x7   :  { %348 = vmatpush3.msra.mxu1 %v18_v3  ;;  %v104_v8 = vld [vmem:[%s544_s1 + $0x18] sm:$0xff]  ;;  %v103_v9 = vld [vmem:[%s544_s1 + $0x8] sm:$0xff]  ;;  %v210_v13 = vld [vmem:[%s545_s2 + $0x60] sm:$0xff] }
   0x8   :  { %349 = vmatprep.subr.mxu1 %v17_v4  ;;  %v213_v10 = vld [vmem:[%s545_s2 + $0x78] sm:$0xff]  ;;  %v211_v12 = vld [vmem:[%s545_s2 + $0x68] sm:$0xff]  ;;  %v208_v15 = vld [vmem:[%s545_s2 + $0x50] sm:$0xff] }
   0x9   :  { %350 = vmatpush3.msra.mxu1 %v17_v4  ;;  %365 = vmatprep.subr.mxu0 %v213_v10  ;;  %v209_v14 = vld [vmem:[%s545_s2 + $0x58] sm:$0xff]  ;;  %v207_v16 = vld [vmem:[%s545_s2 + $0x48] sm:$0xff]  ;;  %v206_v17 = vld [vmem:[%s545_s2 + $0x40] sm:$0xff] }
   0xa   :  { %352 = vmatmul.mubr.msk.f32.vlgmr.msra.gmra.mxu1 %vm21_vm0, %v16_v5  ;;  %354 = vmatprep.subr.mxu1 %v106_v6  ;;  %v205_v18 = vld [vmem:[%s545_s2 + $0x38] sm:$0xff]  ;;  %v204_v19 = vld [vmem:[%s545_s2 + $0x30] sm:$0xff]  ;;  %v203_v20 = vld [vmem:[%s545_s2 + $0x28] sm:$0xff] }
   0xb   :  { %355 = vmatpush3.msra.mxu1 %v106_v6  ;;  %362 = vmatprep.mubr.msk.f32.mxu1 %vm21_vm0, %v15_v2  ;;  %v202_v21 = vld [vmem:[%s545_s2 + $0x20] sm:$0xff]  ;;  %v201_v22 = vld [vmem:[%s545_s2 + $0x18] sm:$0xff]  ;;  %v200_v23 = vld [vmem:[%s545_s2 + $0x10] sm:$0xff] }
   0xc   :  { %356 = vmatprep.subr.mxu1 %v105_v7  ;;  %366 = vmatpush3.msra.mxu0 %v213_v10  ;;  %v199_v24 = vld [vmem:[%s545_s2 + $0x8] sm:$0xff]  ;;  %v198_v25 = vld [vmem:[%s545_s2] sm:$0xff]  ;;  %s433_s2 = smov [#allocation2]  }
   0xd   :  { %357 = vmatpush3.msra.mxu1 %v105_v7  ;;  %367 = vmatprep.subr.mxu0 %v212_v11  ;;  %s296_s7 = sshll.u32 %s433_s2, 4  ;;  %s297_s7 = int_to_ptr.vmem [resolvable:$true] %s296_s7 }
   0xe   :  { %358 = vmatprep.subr.mxu1 %v104_v8  ;;  %368 = vmatpush3.msra.mxu0 %v212_v11  ;;  %s411_s8 = scalar_lea.vmem %s297_s7, 256  ;;  %p416_p1 = scmp.lt.s32.totalorder %s297_s7, %s297_s7 }
   0xf   :  { %359 = vmatpush3.msra.mxu1 %v104_v8  ;;  %369 = vmatprep.subr.mxu0 %v211_v12  ;;  %p412_p0 = scmp.ne.s32.totalorder %s297_s7, %s411_s8  ;;  %p417_p2 = scmp.lt.s32.totalorder %s411_s8, %s411_s8 }
  0x10   :  { %360 = vmatprep.subr.mxu1 %v103_v9  ;;  %370 = vmatpush3.msra.mxu0 %v211_v12 }
  0x11   :  { %361 = vmatpush3.msra.mxu1 %v103_v9  ;;  %371 = vmatprep.subr.mxu0 %v210_v13  ;;  %p418_p3 = por %p417_p2, %p416_p1 }
  0x12   :  { %363 = vmatmul.mubr.msk.f32.vlgmr.msra.gmra.mxu1 %vm21_vm0, %v16_v5  ;;  %372 = vmatpush3.msra.mxu0 %v210_v13 }
  0x13   :  { %373 = vmatprep.subr.mxu0 %v209_v14  ;;  %p419_p4 = pnand %p418_p3, %p412_p0 }
  0x14   :  { %374 = vmatpush3.msra.mxu0 %v209_v14 }
  0x15   :  { %375 = vmatprep.subr.mxu0 %v208_v15 }
  0x16   :  { %376 = vmatpush3.msra.mxu0 %v208_v15 }
  0x17   :  { %377 = vmatprep.subr.mxu0 %v207_v16 }
  0x18   :  { %378 = vmatpush3.msra.mxu0 %v207_v16 }
  0x19   :  { %379 = vmatprep.subr.mxu0 %v206_v17 }
  0x1a   :  { %380 = vmatpush3.msra.mxu0 %v206_v17 }
  0x1b   :  { %381 = vmatprep.subr.mxu0 %v205_v18 }
  0x1c   :  { %382 = vmatpush3.msra.mxu0 %v205_v18 }
  0x1d   :  { %383 = vmatprep.subr.mxu0 %v204_v19 }
  0x1e   :  { %384 = vmatpush3.msra.mxu0 %v204_v19 }
  0x1f   :  { %385 = vmatprep.subr.mxu0 %v203_v20 }
  0x20   :  { %386 = vmatpush3.msra.mxu0 %v203_v20 }
  0x21   :  { %387 = vmatprep.subr.mxu0 %v202_v21 }
  0x22   :  { %388 = vmatpush3.msra.mxu0 %v202_v21 }
  0x23   :  { %389 = vmatprep.subr.mxu0 %v201_v22 }
  0x24   :  { %390 = vmatpush3.msra.mxu0 %v201_v22 }
  0x25   :  { %391 = vmatprep.subr.mxu0 %v200_v23 }
  0x26   :  { %392 = vmatpush3.msra.mxu0 %v200_v23 }
  0x27   :  { %393 = vmatprep.subr.mxu0 %v199_v24 }
  0x28   :  { %394 = vmatpush3.msra.mxu0 %v199_v24 }
  0x29   :  { %395 = vmatprep.subr.mxu0 %v198_v25 }
  0x2a   :  { %396 = vmatpush3.msra.mxu0 %v198_v25 }
  0xca   :  { %v353_v26 = vpop.f32.mrf.mxu1 }
  0xcb   :  { %v312_v27 = vmul.f32 -1.442695, %v353_v26 }
  0xcc   :  { %v94_v28 = vpop.f32.mrf.mxu1 }
  0xcd   :  { %403 = vpow2.f32 %v312_v27  ;;  %v311_v29 = vmul.f32 -1.442695, %v94_v28 }
  0xcf   :  { %405 = vpow2.f32 %v311_v29 }
  0xd2   :  { %v364_v35 = vpop.f32.mrf.mxu1 }
  0xd4   :  { %v173_v39 = vpop.f32.mrf.mxu1 }
  0xda   :  { %v404_v30 = vpop.eup %403 }
  0xdb   :  { %v189_v31 = vadd.f32 1.0, %v404_v30 }
  0xdc   :  { %v406_v32 = vpop.eup %405 }
  0xdd   :  { %407 = vrcp.f32 %v189_v31  ;;  %v188_v33 = vadd.f32 1.0, %v406_v32 }
  0xdf   :  { %409 = vrcp.f32 %v188_v33 }
  0xea   :  { %v408_v34 = vpop.eup %407 }
  0xeb   :  { %v195_v37 = vmul.f32 %v408_v34, %v353_v26 }
  0xec   :  { %v410_v36 = vpop.eup %409 }
  0xed   :  { %v194_v38 = vmul.f32 %v410_v36, %v94_v28  ;;  %v197_v41 = vmul.f32 %v364_v35, %v195_v37 }
  0xef   :  { %v196_v40 = vmul.f32 %v194_v38, %v173_v39 }
  0xf1   :  { %397 = vmatprep.mubr.f32.mxu0 %v196_v40 }
  0xf2   :  { %398 = vmatmul.mubr.f32.vlgmr.msra.gmra.mxu0 %v197_v41 }
 0x1b2   :  { %v399_v42 = vpop.f32.mrf.mxu0 }
 0x1b3   :  { %290 = vst.msk [vmem:[#allocation2 + $0x8] sm:$0xff] %vm21_vm0, %v399_v42 }
 0x1b4   :  { %v280_v43 = vpop.f32.mrf.mxu0 }
 0x1b5   :  { %289 = vst.msk [vmem:[#allocation2] sm:$0xff] %vm21_vm0, %v280_v43 }
 0x1b6   :  { %422 = shalt.err (!%p419_p4)
}
 0x1b7   :  { %s434_s1 = smov 128   ;;  %s435_s9 = smov 8  }
 0x1b8   :  { %302 = dma.vmem_to_hbm [thread:$0]  %s297_s7, 256, %s546_s3, [#allocation3], %s434_s1, %s434_s1, %s435_s9  }
 0x1b9   :  { %431 = dma.done.wait [#allocation3], 256  }
 0x1ba   :  { %432 = vsyncadd [#allocation3], 4294967040 }
 0x1bb   :  { %306 = vsyncpa [#allocation3], 1 }

</bundles_post_ra>
